<compile_context>
chip_gen: v7x
topology: tpu7x:2x2x1
jax: 0.10.0
libtpu: 0.0.40
codegen_flags: <defaults>
</compile_context>

<pallas_src>
import math

import jax
import jax.numpy as jnp
from jax.experimental import pallas as pl
from jax.experimental.pallas import tpu as pltpu


def _sinusoidal_kernel(time_ref, table_ref, out_ref):
    """time_ref: (TILE_B, 1) f32; table_ref: (2, dim) f32 [freqs_full; phase];
    out_ref: (TILE_B, dim) out_dtype."""
    freqs = table_ref[0:1, :]   # (1, dim)
    phase = table_ref[1:2, :]   # (1, dim): 0 for the sin half, pi/2 for the cos half
    # (TILE_B, 1) * (1, dim) + (1, dim) -> (TILE_B, dim), all VPU/EUP work,
    # followed by a single lane-dense unmasked store.
    args = time_ref[...] * freqs + phase
    out_ref[...] = jnp.sin(args).astype(out_ref.dtype)


def _choose_tile_b(B, dim, out_itemsize,
                   target_out_bytes=4 << 20, vmem_budget=20 << 20):
    """Pick a batch tile sized in bytes, VMEM-safe on v7x, megacore-friendly."""
    out_row_bytes = dim * out_itemsize
    # Per-row VMEM cost: double-buffered output block + double-buffered
    # (TILE_B, 1) f32 time block, which pads to 128 lanes (512 B/row/buffer).
    per_row_vmem = 2 * out_row_bytes + 2 * 512
    rows_by_target = max(512, target_out_bytes // max(out_row_bytes, 1))
    rows_by_vmem = max(8, vmem_budget // per_row_vmem)
    rows = min(rows_by_target, rows_by_vmem)
    # Engage both v7x TensorCores once the problem is a few MiB of output,
    # but never split tiny batches (pure per-step overhead).
    if B * out_row_bytes > (4 << 20):
        rows = min(rows, (B + 1) // 2)
    if rows >= B:
        return B
    return max(8, (rows // 8) * 8)


def sinusoidal_position_embeddings(time, dim, *, out_dtype=jnp.float32):
    """Pallas equivalent of SinusoidalPositionEmbeddings(dim).forward(time).

    time: (batch,) float array.  Returns (batch, dim) array of `out_dtype`.
    """
    assert dim % 2 == 0, "dim must be even (same implicit assumption as the PyTorch module)"
    half_dim = dim // 2
    assert half_dim > 1, "half_dim must be > 1 to avoid division by zero in log(10000)/(half_dim-1)"

    B = time.shape[0]
    time2d = time.reshape(B, 1).astype(jnp.float32)

    # Constant tables, computed once in the wrapper (data-independent; XLA
    # constant-folds them).  Row 0: frequencies duplicated over both halves.
    # Row 1: phase (0 for the sin half, pi/2 for the cos half), so the kernel
    # needs a single full-width sin + one unmasked store.
    scale = math.log(10000.0) / (half_dim - 1)
    freqs_half = jnp.exp(jnp.arange(half_dim, dtype=jnp.float32) * (-scale))
    freqs_full = jnp.concatenate([freqs_half, freqs_half]).reshape(1, dim)
    phase = jnp.concatenate(
        [jnp.zeros((half_dim,), jnp.float32),
         jnp.full((half_dim,), math.pi / 2.0, dtype=jnp.float32)]
    ).reshape(1, dim)
    table = jnp.concatenate([freqs_full, phase], axis=0)  # (2, dim)

    out_itemsize = jnp.dtype(out_dtype).itemsize
    TILE_B = _choose_tile_b(B, dim, out_itemsize)
    grid = (pl.cdiv(B, TILE_B),)
    # NOTE: for B not divisible by TILE_B the last step computes on padded rows;
    # Pallas masks the out-of-bounds writeback, so this is benign.

    return pl.pallas_call(
        _sinusoidal_kernel,
        out_shape=jax.ShapeDtypeStruct((B, dim), out_dtype),
        grid=grid,
        in_specs=[
            pl.BlockSpec((TILE_B, 1), lambda i: (i, 0)),   # time rows for this tile
            pl.BlockSpec((2, dim), lambda i: (0, 0)),      # freqs/phase: resident constant block
        ],
        out_specs=pl.BlockSpec((TILE_B, dim), lambda i: (i, 0)),
        compiler_params=pltpu.CompilerParams(
            dimension_semantics=("parallel",),
            vmem_limit_bytes=64 << 20,   # v5e default scoped VMEM (16 MiB) is too small for multi-MiB tiles
        ),
    )(time2d, table)


def _reference(time, dim):
    """Pure-JAX reference replicating the PyTorch forward exactly."""
    half_dim = dim // 2
    emb = math.log(10000.0) / (half_dim - 1)
    freqs = jnp.exp(jnp.arange(half_dim, dtype=jnp.float32) * -emb)
    args = time.astype(jnp.float32)[:, None] * freqs[None, :]
    return jnp.concatenate([jnp.sin(args), jnp.cos(args)], axis=-1)


if __name__ == "__main__":
    key = jax.random.PRNGKey(0)
    batch = 8
    dim = 32  # module's `dim`; half_dim = 16

    # Noise levels / diffusion timesteps: positive floats up to ~1000, deterministic.
    time = jax.random.uniform(key, (batch,), dtype=jnp.float32) * 1000.0

    out = sinusoidal_position_embeddings(time, dim)
    out = jax.block_until_ready(out)

    ref = _reference(time, dim)
    assert out.shape == (batch, dim), out.shape
    assert out.dtype == jnp.float32, out.dtype
    # cos(x) is computed as sin(x + pi/2); at |args| ~ 1e3 the rounded phase add
    # costs a few ulp of the argument (~3e-5 absolute), hence the 1e-4 atol.
    assert jnp.allclose(out, ref, atol=1e-4, rtol=1e-5), "mismatch vs reference"

    print("KERNEL_OK")
</pallas_src>

<mosaic_0001>
module attributes {stable_mosaic.version = 11 : i64} {
  func.func @_sinusoidal_kernel(%arg0: i32, %arg1: memref<8x1xf32, #tpu.memory_space<vmem>>, %arg2: memref<2x32xf32, #tpu.memory_space<vmem>>, %arg3: memref<8x32xf32, #tpu.memory_space<vmem>>) attributes {dimension_semantics = [#tpu.dimension_semantics<parallel>], iteration_bounds = array<i64: 1>, scalar_prefetch = 0 : i64, scratch_operands = 0 : i64, tpu.core_type = #tpu.core_type<tc>, window_params = [{transform_indices = @transform_0, window_bounds = array<i64: 8, 1>}, {pipeline_mode = #tpu.pipeline_mode<synchronous>, transform_indices = @transform_1, window_bounds = array<i64: 2, 32>}, {transform_indices = @transform_2, window_bounds = array<i64: 8, 32>}]} {
    %c0 = arith.constant 0 : index
    %c0_0 = arith.constant 0 : index
    %0 = vector.load %arg2[%c0, %c0_0] : memref<2x32xf32, #tpu.memory_space<vmem>>, vector<1x32xf32>
    %c1 = arith.constant 1 : index
    %c0_1 = arith.constant 0 : index
    %1 = vector.load %arg2[%c1, %c0_1] : memref<2x32xf32, #tpu.memory_space<vmem>>, vector<1x32xf32>
    %c0_2 = arith.constant 0 : index
    %c0_3 = arith.constant 0 : index
    %2 = vector.load %arg1[%c0_2, %c0_3] : memref<8x1xf32, #tpu.memory_space<vmem>>, vector<8x1xf32>
    %3 = vector.broadcast %2 : vector<8x1xf32> to vector<8x32xf32>
    %4 = vector.broadcast %0 : vector<1x32xf32> to vector<8x32xf32>
    %5 = arith.mulf %3, %4 : vector<8x32xf32>
    %6 = vector.broadcast %1 : vector<1x32xf32> to vector<8x32xf32>
    %7 = arith.addf %5, %6 : vector<8x32xf32>
    %8 = math.sin %7 : vector<8x32xf32>
    %c0_4 = arith.constant 0 : index
    %c0_5 = arith.constant 0 : index
    %9 = vector.load %arg3[%c0_4, %c0_5] : memref<8x32xf32, #tpu.memory_space<vmem>>, vector<8x32xf32>
    tpu.vector_store %arg3[%c0_4, %c0_5], %8 {strides = array<i32>} : memref<8x32xf32, #tpu.memory_space<vmem>>, vector<8x32xf32>,
    return
  }
  func.func @transform_0(%arg0: i32) -> (i32, i32) {
    %c0_i32 = arith.constant 0 : i32
    %c0_i32_0 = arith.constant 0 : i32
    return %arg0, %c0_i32 : i32, i32
  }
  func.func @transform_1(%arg0: i32) -> (i32, i32) {
    %c0_i32 = arith.constant 0 : i32
    %c0_i32_0 = arith.constant 0 : i32
    %c0_i32_1 = arith.constant 0 : i32
    return %c0_i32, %c0_i32_0 : i32, i32
  }
  func.func @transform_2(%arg0: i32) -> (i32, i32) {
    %c0_i32 = arith.constant 0 : i32
    %c0_i32_0 = arith.constant 0 : i32
    return %arg0, %c0_i32 : i32, i32
  }
}

</mosaic_0001>

<bundles_post_ra>
// kernel: tpu_custom_call.1
= control target key start
LH: loop header
LB: loop body
LE: loop exit
PB: predicated region body
PF: predicated region fallthrough
CT: control target
= control target key end

     0   :  { %7 = vsyncpa [#allocation3], 0  ;;  %s355_s0 = inlined_call_operand.hbm [shape: f32[8,1], index: 0, kind: input, shape index: {}]   ;;  %s356_s1 = inlined_call_operand.hbm [shape: f32[2,32], index: 1, kind: input, shape index: {}]   ;;  %s357_s2 = inlined_call_operand.hbm [shape: f32[8,32], index: 2, kind: output, shape index: {}]  }
   0x1   :  { %8 = vsyncpa [#allocation6], 0 }
   0x2   :  { %9 = vsyncpa [#allocation4], 0  ;;  %s273_s9 = smov [#allocation2]   ;;  %s274_s11 = smov [#allocation5]  }
   0x3   :  { %s16_s10 = sshll.u32 %s273_s9, 4  ;;  %s26_s12 = sshll.u32 %s274_s11, 4  ;;  %s17_s10 = int_to_ptr.vmem [resolvable:$true] %s16_s10  ;;  %s27_s12 = int_to_ptr.vmem [resolvable:$true] %s26_s12 }
   0x4   :  { %s201_s15 = scalar_lea.hbm %s355_s0, 128 }
   0x5   :  { %p202_p0 = scmp.ne.s32.totalorder %s355_s0, %s201_s15  ;;  %p205_p1 = scmp.lt.u32.totalorder %s201_s15, %s355_s0 }
   0x7   :  { %p207_p2 = pnand %p205_p1, %p202_p0 }
   0x9   :  { %210 = shalt.err (!%p207_p2)
}
   0xa   :  { %s211_s20 = scalar_lea.vmem %s17_s10, 128  ;;  %p216_p4 = scmp.lt.s32.totalorder %s17_s10, %s17_s10 }
   0xb   :  { %p212_p3 = scmp.ne.s32.totalorder %s17_s10, %s211_s20  ;;  %p217_p5 = scmp.lt.s32.totalorder %s211_s20, %s211_s20 }
   0xd   :  { %p218_p6 = por %p217_p5, %p216_p4 }
   0xf   :  { %p219_p7 = pnand %p218_p6, %p212_p3 }
  0x11   :  { %222 = shalt.err (!%p219_p7)
}
  0x12   :  { %19 = dma.hbm_to_vmem [thread:$0]  %s355_s0, 128, %s17_s10, [#allocation3]  }
  0x13   :  { %s223_s25 = scalar_lea.hbm %s356_s1, 32 }
  0x14   :  { %p224_p8 = scmp.ne.s32.totalorder %s356_s1, %s223_s25  ;;  %p227_p9 = scmp.lt.u32.totalorder %s223_s25, %s356_s1 }
  0x16   :  { %p229_p10 = pnand %p227_p9, %p224_p8 }
  0x18   :  { %232 = shalt.err (!%p229_p10)
}
  0x19   :  { %s233_s30 = scalar_lea.vmem %s27_s12, 32  ;;  %p238_p12 = scmp.lt.s32.totalorder %s27_s12, %s27_s12 }
  0x1a   :  { %p234_p11 = scmp.ne.s32.totalorder %s27_s12, %s233_s30  ;;  %p239_p13 = scmp.lt.s32.totalorder %s233_s30, %s233_s30 }
  0x1c   :  { %p240_p0 = por %p239_p13, %p238_p12 }
  0x1e   :  { %p241_p1 = pnand %p240_p0, %p234_p11 }
  0x20   :  { %244 = shalt.err (!%p241_p1)
}
  0x21   :  { %29 = dma.hbm_to_vmem [thread:$0]  %s356_s1, 32, %s27_s12, [#allocation6]  }
  0x22   :  { %267 = dma.done.wait [#allocation3], 128  }
  0x23   :  { %268 = vsyncadd [#allocation3], 4294967168 }
  0x24   :  { %269 = dma.done.wait [#allocation6], 32  }
  0x25   :  { %270 = vsyncadd [#allocation6], 4294967264  ;;  %v275_v0 = vmov 0   ;;  %v38_v1 = vld [vmem:[#allocation2] sm:$0xff]  ;;  %v176_v2 = vld [vmem:[#allocation5] ss:$0 sm:$0xff] }
  0x26   :  { %196 = vset.pattern.permute.xlu0 %v275_v0  ;;  %v177_v4 = vld [vmem:[#allocation5 + $0x1] ss:$0 sm:$0xff]  ;;  %v276_v17 = vmov 683565275   ;;  %v277_v19 = vmov 2475754826  }
  0x27   :  { %41 = vperm.xlu0 %196, %v38_v1   ;;  %v278_v22 = vmov 2131351028   ;;  %v279_v25 = vmov 2102212464   ;;  %v280_v28 = vmov 920167782  }
  0x28   :  { %v281_v31 = vmov 1326507024   ;;  %s282_s1 = smov [#allocation7]   ;;  %vm158_vm12 = vcmask 261120  }
  0x29   :  { %s166_s4 = sshll.u32 %s282_s1, 4  ;;  %s167_s4 = int_to_ptr.vmem [resolvable:$true] %s166_s4 }
  0x2a   :  { %s245_s5 = scalar_lea.vmem %s167_s4, 128  ;;  %p250_p3 = scmp.lt.s32.totalorder %s167_s4, %s167_s4 }
  0x2b   :  { %p246_p2 = scmp.ne.s32.totalorder %s167_s4, %s245_s5  ;;  %p251_p4 = scmp.lt.s32.totalorder %s245_s5, %s245_s5 }
  0x2d   :  { %p252_p5 = por %p251_p4, %p250_p3 }
  0x2f   :  { %p253_p6 = pnand %p252_p5, %p246_p2 }
  0xa6   :  { %v42_v3 = vpop.permute.xlu0 %41 }
  0xa7   :  { %v48_v5 = vmul.f32 %v176_v2, %v42_v3 }
  0xa9   :  { %v322_v6 = vadd.f32 %v177_v4, %v48_v5 }
  0xab   :  { %v57_v7 = vand.u32 2139095040, %v322_v6  ;;  %v54_v11 = vand.u32 2147483647, %v322_v6  ;;  %vm56_vm7 = vcmp.lt.s32.totalorder %v322_v6, 0  ;;  %vm146_vm13 = vweird.f32 %v322_v6 }
  0xad   :  { %v58_v8 = vshrl.u32 %v57_v7, 23  ;;  %v61_v14 = vand.u32 8388607, %v54_v11  ;;  %vm55_vm8 = vcmp.le.f32.partialorder %v54_v11, 0.7853982 }
  0xaf   :  { %v178_v9 = vadd.s32 4294967169, %v58_v8  ;;  %v62_v33 = vor.u32 8388608, %v61_v14 }
  0xb1   :  { %v64_v10 = vadd.s32 1, %v178_v9  ;;  %v102_v47 = vshll.u32 %v62_v33, 8 }
  0xb3   :  { %vm65_vm0 = vcmp.gt.s32.totalorder %v64_v10, 0 }
  0xb4   :  { %v66_v12 = vsel %vm65_vm0, %v64_v10, 0 }
  0xb5   :  { %v68_v13 = vand.u32 31, %v66_v12  ;;  %v67_v16 = vshrl.u32 %v66_v12, 5 }
  0xb7   :  { %v69_v15 = vsub.s32 32, %v68_v13  ;;  %v71_v18 = vshll.u32 %v276_v17, %v68_v13  ;;  %v74_v20 = vshll.u32 %v277_v19, %v68_v13  ;;  %v77_v24 = vshll.u32 %v278_v22, %v68_v13 }
  0xb8   :  { %v80_v27 = vshll.u32 %v279_v25, %v68_v13  ;;  %v83_v30 = vshll.u32 %v280_v28, %v68_v13  ;;  %vm86_vm1 = vcmp.lt.s32.totalorder %v67_v16, 1  ;;  %vm89_vm2 = vcmp.lt.s32.totalorder %v67_v16, 4 }
  0xb9   :  { %v72_v21 = vshrl.u32 %v277_v19, %v69_v15  ;;  %v75_v23 = vshrl.u32 %v278_v22, %v69_v15  ;;  %v78_v26 = vshrl.u32 %v279_v25, %v69_v15  ;;  %v81_v29 = vshrl.u32 %v280_v28, %v69_v15 }
  0xba   :  { %v84_v32 = vshrl.u32 %v281_v31, %v69_v15  ;;  %v70_v42 = vshrl.u32 %v276_v17, %v69_v15  ;;  %vm88_vm3 = vcmp.lt.s32.totalorder %v67_v16, 3  ;;  %vm87_vm4 = vcmp.lt.s32.totalorder %v67_v16, 2 }
  0xbb   :  { %v73_v34 = vor.u32 %v72_v21, %v71_v18  ;;  %v76_v35 = vor.u32 %v75_v23, %v74_v20  ;;  %v79_v36 = vor.u32 %v78_v26, %v77_v24  ;;  %v82_v37 = vor.u32 %v81_v29, %v80_v27 }
  0xbc   :  { %v85_v38 = vor.u32 %v84_v32, %v83_v30 }
  0xbd   :  { %v91_v39 = vsel %vm89_vm2, %v79_v36, 2102212464  ;;  %v94_v40 = vsel %vm86_vm1, %v73_v34, %v76_v35  ;;  %v98_v41 = vsel %vm86_vm1, %v76_v35, %v79_v36  ;;  %v95_v43 = vsel %vm89_vm2, %v82_v37, 920167782 }
  0xbe   :  { %v99_v44 = vsel %vm89_vm2, %v85_v38, 1326507024  ;;  %v96_v45 = vsel %vm88_vm3, %v79_v36, %v95_v43  ;;  %v90_v48 = vsel %vm86_vm1, %v70_v42, %v73_v34  ;;  %v92_v49 = vsel %vm88_vm3, %v76_v35, %v91_v39 }
  0xbf   :  { %v100_v46 = vsel %vm88_vm3, %v82_v37, %v99_v44  ;;  %v97_v50 = vsel %vm87_vm4, %v94_v40, %v96_v45  ;;  %v93_v56 = vsel %vm87_vm4, %v90_v48, %v92_v49 }
  0xc0   :  { %v101_v51 = vsel %vm87_vm4, %v98_v41, %v100_v46  ;;  %v331_v54 = vmul.u32.u64.low %v102_v47, %v97_v50  ;;  %v332_v55 = vmul.u32.u64.high %v102_v47, %v97_v50, %v331_v54  ;;  %v109_v58 = vmul.u32 %v102_v47, %v93_v56 }
  0xc1   :  { %v328_v52 = vmul.u32.u64.low %v102_v47, %v101_v51  ;;  %v329_v53 = vmul.u32.u64.high %v102_v47, %v101_v51, %v328_v52 }
  0xc2   :  { %v112_v57 = vadd.s32 1, %v332_v55 }
  0xc3   :  { %vm111_vm5 = vc.u32 %v329_v53, %v331_v54  ;;  %v110_v7 = vadd.s32 %v331_v54, %v329_v53 }
  0xc4   :  { %v113_v59 = vsel %vm111_vm5, %v112_v57, %v332_v55 }
  0xc5   :  { %v114_v60 = vadd.s32 %v113_v59, %v109_v58 }
  0xc7   :  { %v115_v61 = vadd.s32 536870912, %v114_v60 }
  0xc9   :  { %v116_v62 = vshrl.u32 %v115_v61, 30 }
  0xcb   :  { %v117_v63 = vshll.u32 %v116_v62, 30  ;;  %v140_v20 = vsub.s32 4, %v116_v62 }
  0xcd   :  { %v118_v0 = vsub.s32 %v114_v60, %v117_v63  ;;  %v141_v23 = vsel %vm56_vm7, %v140_v20, %v116_v62 }
  0xce   :  { %v143_v25 = vsel %vm55_vm8, 0, %v141_v23 }
  0xcf   :  { %v120_v1 = vsub.s32 0, %v118_v0  ;;  %v147_v26 = vadd.s32 3, %v143_v25 }
  0xd1   :  { %v179_v2 = vmin.u32 %v120_v1, %v118_v0  ;;  %v148_v27 = vand.u32 3, %v147_v26 }
  0xd3   :  { %v122_v3 = vclz %v179_v2  ;;  %vm153_vm9 = vcmp.eq.s32.totalorder %v148_v27, 2  ;;  %vm150_vm10 = vcmp.eq.s32.totalorder %v148_v27, 0  ;;  %vm149_vm11 = vcmp.lt.s32.totalorder %v148_v27, 2 }
  0xd5   :  { %v180_v4 = vadd.s32 4294967294, %v122_v3 }
  0xd7   :  { %vm181_vm6 = vcmp.lt.s32.totalorder %v180_v4, 0 }
  0xd8   :  { %v125_v5 = vsel %vm181_vm6, 0, %v180_v4 }
  0xd9   :  { %v126_v8 = vsub.s32 32, %v125_v5  ;;  %v130_v9 = vsub.s32 4294967266, %v125_v5  ;;  %v127_v10 = vshll.u32 %v118_v0, %v125_v5 }
  0xdb   :  { %v128_v12 = vshrl.u32 %v110_v7, %v126_v8  ;;  %v131_v13 = vadd.s32 127, %v130_v9 }
  0xdd   :  { %v129_v14 = vor.u32 %v128_v12, %v127_v10  ;;  %v132_v15 = vshll.u32 %v131_v13, 23 }
  0xdf   :  { %v133_v16 = vor.u32 4788187, %v132_v15  ;;  %v136_v18 = vcvt.s32.f32 %v129_v14 }
  0xe1   :  { %v134_v17 = vand.u32 2147483647, %v133_v16 }
  0xe3   :  { %v137_v19 = vmul.f32 %v136_v18, %v134_v17 }
  0xe5   :  { %v138_v21 = vxor.u32 2147483648, %v137_v19 }
  0xe7   :  { %v139_v22 = vsel %vm56_vm7, %v138_v21, %v137_v19 }
  0xe8   :  { %v142_v24 = vsel %vm55_vm8, %v322_v6, %v139_v22 }
  0xe9   :  { %197 = vcosq.f32 %v142_v24 }
  0xea   :  { %199 = vsinq.f32 %v142_v24 }
  0xf3   :  { %v198_v28 = vpop.eup %197 }
  0xf4   :  { %v200_v29 = vpop.eup %199  ;;  %v154_v30 = vxor.u32 2147483648, %v198_v28 }
  0xf5   :  { %v151_v31 = vxor.u32 2147483648, %v200_v29 }
  0xf6   :  { %v155_v32 = vsel %vm153_vm9, %v154_v30, %v200_v29 }
  0xf7   :  { %v152_v33 = vsel %vm150_vm10, %v198_v28, %v151_v31 }
  0xf8   :  { %v156_v11 = vsel %vm149_vm11, %v152_v33, %v155_v32 }
  0xf9   :  { %v157_v34 = vsel %vm146_vm13, nan, %v156_v11 }
  0xfa   :  { %159 = vst.msk [vmem:[#allocation7] sm:$0xff] %vm158_vm12, %v157_v34 }
  0xfb   :  { %256 = shalt.err (!%p253_p6)
}
  0xfc   :  { %s257_s8 = scalar_lea.hbm %s357_s2, 128 }
  0xfd   :  { %p258_p7 = scmp.ne.s32.totalorder %s357_s2, %s257_s8  ;;  %p261_p8 = scmp.lt.u32.totalorder %s257_s8, %s357_s2 }
  0xff   :  { %p263_p9 = pnand %p261_p8, %p258_p7 }
 0x101   :  { %266 = shalt.err (!%p263_p9)
}
 0x102   :  { %169 = dma.vmem_to_hbm [thread:$0]  %s167_s4, 128, %s357_s2, [#allocation4]  }
 0x103   :  { %271 = dma.done.wait [#allocation4], 128  }
 0x104   :  { %272 = vsyncadd [#allocation4], 4294967168 }
 0x105   :  { %173 = vsyncpa [#allocation3], 1 }
 0x106   :  { %174 = vsyncpa [#allocation6], 1 }
 0x107   :  { %175 = vsyncpa [#allocation4], 1 }

</bundles_post_ra>
